<compile_context>
chip_gen: v7x
topology: tpu7x:2x2x1
jax: 0.10.0
libtpu: 0.0.40
codegen_flags: <defaults>
</compile_context>

<pallas_src>
import functools

import numpy as np

import jax
import jax.numpy as jnp
from jax import lax
from jax.experimental import pallas as pl
from jax.experimental.pallas import tpu as pltpu


def _mtp_kernel(x_ref, w_ref, b_ref, o_ref, acc_ref, *, compute_dtype):
    # x_ref  : [tm, tk]   activation tile
    # w_ref  : [tn, tk]   weight tile (PyTorch [V, H] layout, untransposed)
    # b_ref  : [1, tn]    bias tile
    # o_ref  : [tm, tn]   logits tile
    # acc_ref: [tm, tn]   f32 accumulator, persists across the H (k) grid axis
    k = pl.program_id(2)

    @pl.when(k == 0)
    def _init():
        acc_ref[...] = jnp.zeros_like(acc_ref)

    x = x_ref[...]
    w = w_ref[...]
    if compute_dtype is not None:
        x = x.astype(compute_dtype)
        w = w.astype(compute_dtype)
    # Contract H (last dim of both operands) -> [tm, tn].
    acc_ref[...] += lax.dot_general(
        x, w,
        dimension_numbers=(((1,), (1,)), ((), ())),
        preferred_element_type=jnp.float32,
    )

    @pl.when(k == pl.num_programs(2) - 1)
    def _finalize():
        o_ref[...] = (acc_ref[...] + b_ref[...].astype(jnp.float32)).astype(o_ref.dtype)


def mtp_forward(hidden_states, weight, bias, *, tm=256, tn=512, tk=1024,
                compute_dtype=None, out_dtype=None):
    """Pallas implementation of MultiTokenPrediction.forward (inference path).

    Args:
      hidden_states: [B, S, H]
      weight:        [V, H]  (PyTorch nn.Linear layout, NOT transposed)
      bias:          [V]
      tm, tn, tk:    tile sizes for the M = B*S, vocab, and hidden axes
                     (clamped to the array extents).
      compute_dtype: optional dtype the MXU operands are cast to in-kernel
                     (e.g. jnp.bfloat16); accumulation is always float32.
      out_dtype:     logits dtype (defaults to hidden_states.dtype).

    Returns:
      (logits [B, S, V], None)
    """
    B, S, H = hidden_states.shape
    V, Hw = weight.shape
    assert Hw == H, "weight must be [vocab, hidden]"
    assert bias.shape == (V,)

    M = B * S
    out_dtype = out_dtype if out_dtype is not None else hidden_states.dtype

    # Clamp tiles to the array extents (full-extent blocks are always legal).
    tm, tn, tk = min(tm, M), min(tn, V), min(tk, H)
    assert M % tm == 0 and V % tn == 0 and H % tk == 0, (
        f"dims must be tile multiples: M={M}/tm={tm}, V={V}/tn={tn}, H={H}/tk={tk}")
    # (8, 128) layout constraints apply when a tile is smaller than the extent.
    if tm < M:
        assert tm % 8 == 0, "tm must be a multiple of 8"
    if tk < H:
        assert tk % 128 == 0, "tk must be a multiple of 128"
    if tn < V:
        assert tn % 128 == 0, "tn must be a multiple of 128"

    x2d = hidden_states.reshape(M, H)
    b2d = bias.reshape(1, V)

    grid = (M // tm, V // tn, H // tk)

    in_bytes = (x2d.size * x2d.dtype.itemsize
                + weight.size * weight.dtype.itemsize
                + b2d.size * b2d.dtype.itemsize)
    out_bytes = M * V * np.dtype(out_dtype).itemsize
    cost = pl.CostEstimate(flops=2 * M * V * H,
                           transcendentals=0,
                           bytes_accessed=in_bytes + out_bytes)

    kernel = functools.partial(_mtp_kernel, compute_dtype=compute_dtype)

    logits2d = pl.pallas_call(
        kernel,
        out_shape=jax.ShapeDtypeStruct((M, V), out_dtype),
        grid_spec=pltpu.PrefetchScalarGridSpec(
            num_scalar_prefetch=0,
            grid=grid,
            in_specs=[
                pl.BlockSpec((tm, tk), lambda i, j, k: (i, k)),   # activations
                pl.BlockSpec((tn, tk), lambda i, j, k: (j, k)),   # weight [V, H]
                pl.BlockSpec((1, tn), lambda i, j, k: (0, j)),    # bias
            ],
            out_specs=pl.BlockSpec((tm, tn), lambda i, j, k: (i, j)),
            scratch_shapes=[pltpu.VMEM((tm, tn), jnp.float32)],
        ),
        compiler_params=pltpu.CompilerParams(
            # M and V tiles are independent (megacore-shardable on v7x);
            # the H reduction must stay sequential.
            dimension_semantics=("parallel", "parallel", "arbitrary"),
            # Explicit budget: default tiles use ~12 MiB double-buffered;
            # 48 MiB is safe on v5e/v6e (128 MiB) and v7x (64 MiB physical).
            vmem_limit_bytes=48 * 1024 * 1024,
        ),
        cost_estimate=cost,
    )(x2d, weight, b2d)

    logits = logits2d.reshape(B, S, V)
    # TODO(synk): CrossEntropyLoss branch only runs in training mode with
    # labels; the inference path returns loss=None, matching the reference.
    return logits, None


if __name__ == "__main__":
    # Small, tile-friendly shapes consistent with the module's forward.
    batch, seq, hidden, vocab = 2, 64, 256, 512

    key = jax.random.PRNGKey(0)
    k_x, k_w, k_b = jax.random.split(key, 3)

    hidden_states = jax.random.normal(k_x, (batch, seq, hidden), dtype=jnp.float32)
    # Parameter init mirroring _init_weights: weight ~ N(0, 0.02), bias = 0.
    weight = 0.02 * jax.random.normal(k_w, (vocab, hidden), dtype=jnp.float32)
    bias = jnp.zeros((vocab,), dtype=jnp.float32)

    # 1) f32 path with small explicit tiles so the M/V/H grid and the f32
    #    accumulator logic are all exercised (grid = (2, 4, 2)).
    logits, loss = mtp_forward(hidden_states, weight, bias, tm=64, tn=128, tk=128)
    logits = jax.block_until_ready(logits)

    ref = jnp.einsum("bsh,vh->bsv", hidden_states, weight) + bias
    assert logits.shape == (batch, seq, vocab)
    assert loss is None
    assert jnp.allclose(logits, ref, atol=1e-3, rtol=1e-3), (
        "max abs err = " + str(float(jnp.max(jnp.abs(logits - ref)))))

    # 2) bf16-at-rest path: bf16 activations + weights (halved HBM traffic,
    #    full-rate MXU), f32 accumulation, bf16 logits, non-zero bias,
    #    default wide tiles.
    hs_bf16 = hidden_states.astype(jnp.bfloat16)
    w_bf16 = weight.astype(jnp.bfloat16)
    bias_nz = 0.1 * jax.random.normal(k_b, (vocab,), dtype=jnp.float32)
    logits_bf16, _ = mtp_forward(hs_bf16, w_bf16, bias_nz)
    logits_bf16 = jax.block_until_ready(logits_bf16)

    ref_bf16 = jnp.einsum("bsh,vh->bsv",
                          hs_bf16.astype(jnp.float32),
                          w_bf16.astype(jnp.float32),
                          precision=lax.Precision.HIGHEST) + bias_nz
    assert jnp.allclose(logits_bf16.astype(jnp.float32), ref_bf16,
                        atol=2e-2, rtol=2e-2)

    print("KERNEL_OK")
</pallas_src>

<mosaic_0001>
module attributes {stable_mosaic.version = 11 : i64} {
  func.func @_mtp_kernel(%arg0: i32, %arg1: i32, %arg2: i32, %arg3: memref<64x128xf32, #tpu.memory_space<vmem>>, %arg4: memref<128x128xf32, #tpu.memory_space<vmem>>, %arg5: memref<1x128xf32, #tpu.memory_space<vmem>>, %arg6: memref<64x128xf32, #tpu.memory_space<vmem>>, %arg7: memref<64x128xf32, #tpu.memory_space<vmem>>) attributes {dimension_semantics = [#tpu.dimension_semantics<parallel>, #tpu.dimension_semantics<parallel>, #tpu.dimension_semantics<arbitrary>], iteration_bounds = array<i64: 2, 4, 2>, scalar_prefetch = 0 : i64, scratch_operands = 1 : i64, tpu.core_type = #tpu.core_type<tc>, window_params = [{transform_indices = @transform_0, window_bounds = array<i64: 64, 128>}, {transform_indices = @transform_1, window_bounds = array<i64: 128, 128>}, {transform_indices = @transform_2, window_bounds = array<i64: 1, 128>}, {transform_indices = @transform_3, window_bounds = array<i64: 64, 128>}]} {
    %c0_i32 = arith.constant 0 : i32
    %0 = arith.cmpi eq, %arg2, %c0_i32 : i32
    %1 = arith.extui %0 : i1 to i32
    %c0_i32_0 = arith.constant 0 : i32
    %2 = arith.cmpi ne, %1, %c0_i32_0 : i32
    scf.if %2 {
      %cst_9 = arith.constant 0.000000e+00 : f32
      %12 = vector.broadcast %cst_9 : f32 to vector<64x128xf32>
      %c0_10 = arith.constant 0 : index
      %c0_11 = arith.constant 0 : index
      %13 = vector.load %arg7[%c0_10, %c0_11] : memref<64x128xf32, #tpu.memory_space<vmem>>, vector<64x128xf32>
      tpu.vector_store %arg7[%c0_10, %c0_11], %12 {strides = array<i32>} : memref<64x128xf32, #tpu.memory_space<vmem>>, vector<64x128xf32>,
    } else {
    }
    %c0 = arith.constant 0 : index
    %c0_1 = arith.constant 0 : index
    %3 = vector.load %arg3[%c0, %c0_1] : memref<64x128xf32, #tpu.memory_space<vmem>>, vector<64x128xf32>
    %c0_2 = arith.constant 0 : index
    %c0_3 = arith.constant 0 : index
    %4 = vector.load %arg4[%c0_2, %c0_3] : memref<128x128xf32, #tpu.memory_space<vmem>>, vector<128x128xf32>
    %c0_4 = arith.constant 0 : index
    %c0_5 = arith.constant 0 : index
    %5 = vector.load %arg7[%c0_4, %c0_5] : memref<64x128xf32, #tpu.memory_space<vmem>>, vector<64x128xf32>
    %cst = arith.constant dense<0.000000e+00> : vector<64x128xf32>
    %6 = tpu.matmul %3, %4, %cst {dimension_numbers = #tpu.dot_dimension_numbers<[1], [1], [0], [0], [0, 0, 1, 0], [], []>} : vector<64x128xf32>, vector<128x128xf32>, vector<64x128xf32> -> vector<64x128xf32>
    %7 = arith.addf %5, %6 : vector<64x128xf32>
    %c0_6 = arith.constant 0 : index
    %c0_7 = arith.constant 0 : index
    %8 = vector.load %arg7[%c0_6, %c0_7] : memref<64x128xf32, #tpu.memory_space<vmem>>, vector<64x128xf32>
    tpu.vector_store %arg7[%c0_6, %c0_7], %7 {strides = array<i32>} : memref<64x128xf32, #tpu.memory_space<vmem>>, vector<64x128xf32>,
    %c1_i32 = arith.constant 1 : i32
    %9 = arith.cmpi eq, %arg2, %c1_i32 : i32
    %10 = arith.extui %9 : i1 to i32
    %c0_i32_8 = arith.constant 0 : i32
    %11 = arith.cmpi ne, %10, %c0_i32_8 : i32
    scf.if %11 {
      %c0_9 = arith.constant 0 : index
      %c0_10 = arith.constant 0 : index
      %12 = vector.load %arg7[%c0_9, %c0_10] : memref<64x128xf32, #tpu.memory_space<vmem>>, vector<64x128xf32>
      %c0_11 = arith.constant 0 : index
      %c0_12 = arith.constant 0 : index
      %13 = vector.load %arg5[%c0_11, %c0_12] : memref<1x128xf32, #tpu.memory_space<vmem>>, vector<1x128xf32>
      %14 = vector.broadcast %13 : vector<1x128xf32> to vector<64x128xf32>
      %15 = arith.addf %12, %14 : vector<64x128xf32>
      %c0_13 = arith.constant 0 : index
      %c0_14 = arith.constant 0 : index
      %16 = vector.load %arg6[%c0_13, %c0_14] : memref<64x128xf32, #tpu.memory_space<vmem>>, vector<64x128xf32>
      tpu.vector_store %arg6[%c0_13, %c0_14], %15 {strides = array<i32>} : memref<64x128xf32, #tpu.memory_space<vmem>>, vector<64x128xf32>,
    } else {
    }
    return
  }
  func.func @transform_0(%arg0: i32, %arg1: i32, %arg2: i32) -> (i32, i32) {
    %c0_i32 = arith.constant 0 : i32
    return %arg0, %arg2 : i32, i32
  }
  func.func @transform_1(%arg0: i32, %arg1: i32, %arg2: i32) -> (i32, i32) {
    %c0_i32 = arith.constant 0 : i32
    return %arg1, %arg2 : i32, i32
  }
  func.func @transform_2(%arg0: i32, %arg1: i32, %arg2: i32) -> (i32, i32) {
    %c0_i32 = arith.constant 0 : i32
    %c0_i32_0 = arith.constant 0 : i32
    return %c0_i32, %arg1 : i32, i32
  }
  func.func @transform_3(%arg0: i32, %arg1: i32, %arg2: i32) -> (i32, i32) {
    %c0_i32 = arith.constant 0 : i32
    return %arg0, %arg1 : i32, i32
  }
}

</mosaic_0001>

<bundles_post_ra>
// kernel: tpu_custom_call.1
= control target key start
LH: loop header
LB: loop body
LE: loop exit
PB: predicated region body
PF: predicated region fallthrough
CT: control target
= control target key end

     0   :  { %s1616_s0 = inlined_call_operand.hbm [shape: f32[128,256], index: 0, kind: input, shape index: {}]   ;;  %s1617_s1 = inlined_call_operand.hbm [shape: f32[512,256], index: 1, kind: input, shape index: {}]   ;;  %s1618_s2 = inlined_call_operand.vmem [shape: f32[1,512], index: 2, kind: input, shape index: {}]   ;;  %s1619_s3 = inlined_call_operand.hbm [shape: f32[128,512], index: 3, kind: output, shape index: {}]  }
   0x1   :  { %1637 = sst [smem:[#allocation19_spill]] %s1616_s0 }
   0x2   :  { %1638 = sst [smem:[#allocation20_spill]] %s1617_s1 }
   0x3   :  { %1639 = sst [smem:[#allocation21_spill]] %s1619_s3 }
   0x4   :  { %8 = vsyncpa [#allocation4], 0 }
   0x5   :  { %10 = vsyncpa [#allocation4 + $0x1], 0 }
   0x6   :  { %11 = vsyncpa [#allocation7], 0 }
   0x7   :  { %13 = vsyncpa [#allocation7 + $0x1], 0 }
   0x8   :  { %14 = vsyncpa [#allocation5], 0 }
   0x9   :  { %16 = vsyncpa [#allocation5 + $0x1], 0  ;;  %s1175_s12 = smov 0   ;;  %s1177_s13 = smov 0  }
   0xa   :  { %s1179_s14 = smov 0   ;;  %s1181_s15 = smov 0  }
   0xb   :  { %s1183_s16 = smov 0   ;;  %s1185_s17 = smov 0  }
   0xc   :  { %s1187_s18 = smov 0   ;;  %s1189_s19 = smov 0  }
   0xd   :  { %s1191_s20 = smov 0   ;;  %s1193_s21 = smov 0  }
   0xe   :  { %s1195_s22 = smov 0   ;;  %s1197_s23 = smov 0  }
   0xf   :  { %s1199_s24 = smov 0   ;;  %s1201_s25 = smov 0  }
  0x10   :  { %s1203_s26 = smov 0   ;;  %s1205_s27 = smov 0  }
  0x11 LB: > { %1640 = sst [smem:[#allocation12_spill]] %s1119_s21  ;;  %s34_s28 = sadd.s32 1, %s1131_s24  ;;  %s1143_s27 = sphi %s1205_s27, %s22_s27   ;;  %s1139_s26 = sphi %s1203_s26, %s1681_s26   ;;  %s1135_s25 = sphi %s1201_s25, %s1694_s25   ;;  %s1131_s24 = sphi %s1199_s24, %s1693_s24   ;;  %s1127_s23 = sphi %s1197_s23, %s1678_s23   ;;  %s1123_s22 = sphi %s1195_s22, %s1692_s22   ;;  %s1119_s21 = sphi %s1193_s21, %s1691_s21   ;;  %s1115_s20 = sphi %s1191_s20, %s1690_s20   ;;  %s1111_s19 = sphi %s1189_s19, %s1689_s19   ;;  %s1107_s18 = sphi %s1187_s18, %s1688_s18   ;;  %s1103_s17 = sphi %s1185_s17, %s1687_s17   ;;  %s1099_s16 = sphi %s1183_s16, %s1686_s16   ;;  %s1095_s15 = sphi %s1181_s15, %s1685_s15   ;;  %s1091_s14 = sphi %s1179_s14, %s1684_s14   ;;  %s1087_s13 = sphi %s1177_s13, %s1683_s13   ;;  %s1083_s12 = sphi %s1175_s12, %s1682_s12  }
  0x12   : > { %1641 = sst [smem:[#allocation13_spill]] %s1127_s23  ;;  %s1620_s29 = sadd.s32 4294967295, %s1143_s27  }
  0x13   : > { %1642 = sst [smem:[#allocation14_spill]] %s1139_s26  ;;  %p1255_p0 = scmp.ge.s32.totalorder %s34_s28, 2 }
  0x14   : > { %p57_p1 = scmp.ne.s32.totalorder %s1115_s20, %s1111_s19  ;;  %p1624_p2 = scmp.eq.s32.totalorder %s1143_s27, 0 }
  0x15   : > { %s1696_s28 = smov (%p1255_p0, %s34_s28), 0  ;;  %p63_p3 = scmp.ne.s32.totalorder %s1111_s19, %s1107_s18 }
  0x16   : > { %1644 = sst [smem:[#allocation15_spill]] %s1696_s28  ;;  %p1271_p4 = scmp.eq.s32.totalorder %s1620_s29, 0 }
  0x17   : > { %s1277_s7 = ssub.s32 %s1131_s24, %s1696_s28  ;;  %p59_p5 = por %p1624_p2, %p57_p1 }
  0x18   : > { %s1645_s6 = scalar_select %p1271_p4, 1, 0 }
  0x19   : > { %p1283_p6 = por %p1271_p4, %p63_p3  ;;  %p1623_p7 = scmp.lt.s32.totalorder %s1143_s27, 16 }
  0x1a   : > { %s169_s9 = sand.u32 1, %s1115_s20   ;;  %s644_s11 = sshll.u32 %s1139_s26, 4 }
  0x1b   : > { %s1646_s8 = scalar_select %p1283_p6, 1, 0 }
  0x1c   : > { %s623_s10 = sshll.u32 %s169_s9, 6  ;;  %s179_s18 = sadd.s32 %s1131_s24, %s644_s11 }
  0x1d   : > { %s173_s5 = scalar_lea.vmem [#allocation3], %s623_s10  ;;  %s626_s29 = sshll.u32 %s179_s18, 7 }
  0x1e   : > { %s182_s4 = sshll.u32 %s173_s5, 4  ;;  %s1647_s0 = sld [smem:[#allocation19_spill]]  ;;  %s1291_s4 = int_to_ptr.vmem [resolvable:$true] %s182_s4 }
  0x1f   : > { %p1300_p8 = pnand %p1623_p7, %p59_p5  ;;  %s1304_s5 = scalar_lea.sflag [#allocation4], %s169_s9 }
  0x21   : > { %p919_p10 = pneg %p1300_p8 }
  0x24   : > { %s1296_s23 = scalar_lea.hbm %s1647_s0, %s626_s29  ;;  %s922_s29 = scalar_lea.hbm %s1647_s0, 4096 }
  0x25   : > { %s917_s10 = scalar_lea.hbm %s1296_s23, 1024  ;;  %p923_p13 = scmp.lt.u32.totalorder %s1296_s23, %s1647_s0 }
  0x26   : > { %p918_p9 = scmp.ne.s32.totalorder %s1296_s23, %s917_s10  ;;  %p924_p1 = scmp.lt.u32.totalorder %s922_s29, %s917_s10 }
  0x27   : > { %p926_p5 = scmp.lt.u32.totalorder %s917_s10, %s1296_s23 }
  0x28   : > { %p920_p11 = pnand %p919_p10, %p918_p9  ;;  %p925_p3 = por %p924_p1, %p923_p13 }
  0x2a   : > { %p921_p12 = pneg %p920_p11  ;;  %p927_p7 = por %p926_p5, %p925_p3 }
  0x2c   : > { %p928_p2 = pnand %p927_p7, %p921_p12 }
  0x2e   : > { %931 = shalt.err (!%p928_p2)
}
  0x2f   : > { %s932_s9 = scalar_lea.vmem %s1291_s4, 1024  ;;  %s1145_s3 = smov [#allocation3]  }
  0x30   : > { %p933_p9 = scmp.ne.s32.totalorder %s1291_s4, %s932_s9  ;;  %s937_s28 = sshll.u32 %s1145_s3, 4  ;;  %s938_s28 = int_to_ptr.vmem [resolvable:$false] %s937_s28 }
  0x31   : > { %s939_s11 = scalar_lea.vmem %s938_s28, 2048  ;;  %p940_p4 = scmp.lt.s32.totalorder %s1291_s4, %s938_s28 }
  0x32   : > { %p935_p11 = pnand %p933_p9, %p919_p10  ;;  %p941_p13 = scmp.lt.s32.totalorder %s939_s11, %s932_s9 }
  0x34   : > { %p936_p6 = pneg %p935_p11  ;;  %p942_p1 = por %p941_p13, %p940_p4 }
  0x36   : > { %p943_p3 = pnand %p942_p1, %p936_p6 }
  0x38   : > { %946 = shalt.err (!%p943_p3)
}
  0x39   : > { %s1627_s10 = smov 256   ;;  %s1628_s29 = smov 128  }
  0x3a   : > { %s1629_s18 = smov 8   ;;  %p631_p2 = scmp.ge.s32.totalorder %s1143_s27, 1 }
  0x3b   : > { %772 = dma.hbm_to_vmem [thread:$0]  (!%p1300_p8), %s1296_s23, 1024, %s1291_s4, %s1304_s5, %s1627_s10, %s1628_s29, %s1629_s18  }
  0x3c   : > { %p219_p4 = scmp.lt.s32.totalorder %s1143_s27, 17  ;;  %s1649_s9 = sadd.s32 4294967295, %s1143_s27  }
  0x3d   : > { %p1339_p6 = scmp.eq.s32.totalorder %s1649_s9, 15  ;;  %s620_s21 = sadd.s32 4294967294, %s1143_s27  }
  0x3e   : > { %p1343_p7 = pnand %p631_p2, %p219_p4  ;;  %s37_s11 = sadd.s32 1, %s1135_s25 }
  0x3f   : > { %s1698_s11 = smov (!%p1255_p0, %s37_s11), %s1135_s25  ;;  %s78_s23 = sadd.s32 1, %s1103_s17 }
  0x40   : > { %p91_p8 = scmp.ne.s32.totalorder %s1099_s16, %s1095_s15  ;;  %p39_p10 = scmp.ge.s32.totalorder %s1698_s11, 4 }
  0x41   : > { %p85_p12 = scmp.ne.s32.totalorder %s1103_s17, %s1099_s16  ;;  %p1652_p5 = scmp.ne.s32.totalorder %s1645_s6, 0 }
  0x42   : > { %s132_s5 = sadd.s32 1, %s1091_s14  ;;  %s1700_s11 = smov (%p39_p10, %s1698_s11), 0 }
  0x43   : > { %p1359_p9 = por %p91_p8, %p1652_p5  ;;  %1654 = sst [smem:[#allocation16_spill]] %s1700_s11 }
  0x44   : > { %s1655_s9 = sadd.s32 1, %s1139_s26  ;;  %s73_s30 = ssub.s32 %s1135_s25, %s1700_s11 }
  0x45   : > { %s1653_s4 = scalar_select %p1359_p9, 1, 0 }
  0x46   : > { %s1702_s9 = smov (!%p39_p10, %s1655_s9), %s1139_s26  ;;  %p142_p0 = scmp.ne.s32.totalorder %s1091_s14, %s1087_s13 }
  0x47   : > { %p43_p11 = scmp.ge.s32.totalorder %s1702_s9, 2  ;;  %s75_s15 = sor.u32 %s73_s30, %s1277_s7 }
  0x48   : > { %p76_p13 = scmp.eq.s32.totalorder %s75_s15, 0  ;;  %p1376_p1 = por %p1339_p6, %p142_p0 }
  0x49   : > { %s1704_s9 = smov (%p43_p11, %s1702_s9), 0  ;;  %p148_p3 = scmp.ne.s32.totalorder %s1087_s13, %s1083_s12 }
  0x4a   : > { %s1656_s6 = scalar_select %p1376_p1, 1, 0 }
  0x4b   : > { %1658 = sst [smem:[#allocation18_spill]] %s1704_s9  ;;  %s45_s29 = ssub.s32 %s1139_s26, %s1704_s9 }
  0x4c   : > { %1657 = sst [smem:[#allocation17_spill]] %s1656_s6  ;;  %s47_s18 = sor.u32 %s1277_s7, %s45_s29 }
  0x4d   : > { %s1383_s10 = scalar_select %p76_p13, %s1103_s17, %s78_s23  }
  0x4e   : > { %s129_s0 = sor.u32 %s73_s30, %s45_s29  ;;  %p48_p2 = scmp.eq.s32.totalorder %s47_s18, 0 }
  0x4f   : > { %p130_p4 = scmp.eq.s32.totalorder %s129_s0, 0  ;;  %p149_p8 = scmp.eq.s32.totalorder %s620_s21, 15 }
  0x50   : > { %s192_s3 = sand.u32 1, %s1103_s17   ;;  %s1659_s15 = sadd.s32 1, %s1115_s20 }
  0x51   : > { %s1394_s11 = scalar_select %p48_p2, %s1115_s20, %s1659_s15  }
  0x52   : > { %s1397_s6 = scalar_select %p130_p4, %s1091_s14, %s132_s5  }
  0x53   : > { %p1660_p6 = scmp.eq.s32.totalorder %s1143_s27, 0  ;;  %p1404_p5 = por %p149_p8, %p148_p3 }
  0x54   : > { %s627_s9 = sshll.u32 %s192_s3, 7  ;;  %s645_s7 = sshll.u32 %s1135_s25, 5 }
  0x55   : > { %p87_p10 = por %p85_p12, %p1660_p6  ;;  %s202_s29 = sadd.s32 %s1131_s24, %s645_s7 }
  0x56   : > { %s1661_s23 = scalar_select %p1404_p5, 1, 0 }
  0x57   : > { %s630_s18 = sshll.u32 %s202_s29, 7  ;;  %s196_s30 = scalar_lea.vmem [#allocation6], %s627_s9 }
  0x58   : > { %s205_s0 = sshll.u32 %s196_s30, 4  ;;  %s1662_s1 = sld [smem:[#allocation20_spill]]  ;;  %s1415_s0 = int_to_ptr.vmem [resolvable:$true] %s205_s0 }
  0x59   : > { %p1663_p12 = scmp.lt.s32.totalorder %s1143_s27, 16  ;;  %s1423_s9 = scalar_lea.sflag [#allocation7], %s192_s3 }
  0x5b   : > { %p1419_p0 = pnand %p1663_p12, %p87_p10 }
  0x5d   : > { %p949_p13 = pneg %p1419_p0 }
  0x5e   : > { %s1413_s15 = scalar_lea.hbm %s1662_s1, %s630_s18  ;;  %s952_s18 = scalar_lea.hbm %s1662_s1, 16384 }
  0x5f   : > { %s947_s7 = scalar_lea.hbm %s1413_s15, 2048  ;;  %p953_p4 = scmp.lt.u32.totalorder %s1413_s15, %s1662_s1 }
  0x60   : > { %p948_p11 = scmp.ne.s32.totalorder %s1413_s15, %s947_s7  ;;  %p954_p8 = scmp.lt.u32.totalorder %s952_s18, %s947_s7 }
  0x61   : > { %p956_p10 = scmp.lt.u32.totalorder %s947_s7, %s1413_s15 }
  0x62   : > { %p950_p3 = pnand %p949_p13, %p948_p11  ;;  %p955_p6 = por %p954_p8, %p953_p4 }
  0x64   : > { %p951_p2 = pneg %p950_p3  ;;  %p957_p12 = por %p956_p10, %p955_p6 }
  0x66   : > { %p958_p5 = pnand %p957_p12, %p951_p2 }
  0x68   : > { %961 = shalt.err (!%p958_p5)
}
  0x69   : > { %s962_s3 = scalar_lea.vmem %s1415_s0, 2048  ;;  %s1149_s26 = smov [#allocation6]  }
  0x6a   : > { %p963_p11 = scmp.ne.s32.totalorder %s1415_s0, %s962_s3  ;;  %s967_s29 = sshll.u32 %s1149_s26, 4  ;;  %s968_s29 = int_to_ptr.vmem [resolvable:$false] %s967_s29 }
  0x6b   : > { %s969_s30 = scalar_lea.vmem %s968_s29, 4096  ;;  %p970_p9 = scmp.lt.s32.totalorder %s1415_s0, %s968_s29 }
  0x6c   : > { %p965_p3 = pnand %p963_p11, %p949_p13  ;;  %p971_p4 = scmp.lt.s32.totalorder %s969_s30, %s962_s3 }
  0x6e   : > { %p966_p1 = pneg %p965_p3  ;;  %p972_p8 = por %p971_p4, %p970_p9 }
  0x70   : > { %p973_p6 = pnand %p972_p8, %p966_p1 }
  0x72   : > { %976 = shalt.err (!%p973_p6)
}
  0x73   : > { %s1665_s7 = smov 8   ;;  %s1666_s18 = smov 128  }
  0x74   : > { %s1667_s21 = smov 256   ;;  %223 = sbr.rel (%p1343_p7) target bundleno = 474 (0x1da), region = 32 }
  0x75   : > { %775 = dma.hbm_to_vmem [thread:$0]  (!%p1419_p0), %s1413_s15, 2048, %s1415_s0, %s1423_s9, %s1667_s21, %s1666_s18, %s1665_s7  }
  0x76   : > { %s225_s26 = sand.u32 (!%p1343_p7), 1, %s1111_s19   ;;  %p1668_p9 = scmp.ne.s32.totalorder (!%p1343_p7), %s1646_s8, 0 }
  0x77   : > { %s632_s29 = sshll.u32 (!%p1343_p7), %s225_s26, 6  ;;  %s226_s3 = scalar_lea.sflag (!%p1343_p7), [#allocation4], %s225_s26 }
  0x78   : > { %s1457_s30 = scalar_lea.vmem (!%p1343_p7), [#allocation3], %s632_s29 }
  0x7b   : > { %1070 = dma.done.wait (%p1668_p9), %s226_s3, 1024  }
  0x7c   : > { %1072 = vsyncadd (%p1668_p9), %s226_s3, 4294966272  ;;  %s234_s5 = sand.u32 1, %s1099_s16   ;;  %p1669_p7 = scmp.ne.s32.totalorder %s1653_s4, 0 }
  0x7d   : > { %s633_s1 = sshll.u32 %s234_s5, 7  ;;  %s235_s0 = scalar_lea.sflag [#allocation7], %s234_s5 }
  0x7e   : > { %s1464_s15 = scalar_lea.vmem [#allocation6], %s633_s1 }
  0x7f   : > { %1074 = dma.done.wait (%p1669_p7), %s235_s0, 2048  }
  0x80   : > { %1076 = vsyncadd (%p1669_p7), %s235_s0, 4294965248  ;;  %s266_s28 = sand.u32 1, %s1087_s13   ;;  %p271_p1 = scmp.lt.s32.totalorder %s1123_s22, 3 }
  0x81   : > { %s634_s8 = sshll.u32 %s266_s28, 6  ;;  %s1670_s26 = sld [smem:[#allocation12_spill]] }
  0x82   : > { %s1475_s9 = scalar_select %p271_p1, %s1123_s22, 3 }
  0x83   : > { %s1481_s21 = scalar_lea.vmem [#allocation8], %s634_s8 }
  0x84   : > { %s273_s1 = scalar_lea.vmem %s1618_s2, %s1475_s9 }
  0x87   : > { %p635_p5 = scmp.ne.s32.totalorder %s1670_s26, 0 }
  0x88   : > { %v1150_v0 = vmov (!%p635_p5), 0.0  }
  0x89   : > { %278 = sbr.rel (%p635_p5) target bundleno = 144 (0x90), region = 44  ;;  %279 = vst [vmem:[#allocation2] sm:$0xff] (!%p635_p5), %v1150_v0  ;;  %280 = vst [vmem:[#allocation2 + $0x8] sm:$0xff] (!%p635_p5), %v1150_v0 }
  0x8a   : > { %281 = vst [vmem:[#allocation2 + $0x10] sm:$0xff] (!%p635_p5), %v1150_v0  ;;  %282 = vst [vmem:[#allocation2 + $0x18] sm:$0xff] (!%p635_p5), %v1150_v0 }
  0x8b   : > { %283 = vst [vmem:[#allocation2 + $0x20] sm:$0xff] (!%p635_p5), %v1150_v0  ;;  %284 = vst [vmem:[#allocation2 + $0x28] sm:$0xff] (!%p635_p5), %v1150_v0 }
  0x8c   : > { %285 = vst [vmem:[#allocation2 + $0x30] sm:$0xff] (!%p635_p5), %v1150_v0  ;;  %286 = vst [vmem:[#allocation2 + $0x38] sm:$0xff] (!%p635_p5), %v1150_v0 }
  0x90 PF: > { %v295_v1 = vld [vmem:[%s1464_s15] sm:$0xff]  ;;  %v296_v2 = vld [vmem:[%s1464_s15 + $0x8] sm:$0xff]  ;;  %v297_v3 = vld [vmem:[%s1464_s15 + $0x10] sm:$0xff]  ;;  %s1671_s4 = sld [smem:[#allocation12_spill]] }
  0x91   : > { %v715_v4 = vpack.c.bf16 %v296_v2, %v295_v1  ;;  %v298_v5 = vld [vmem:[%s1464_s15 + $0x18] sm:$0xff]  ;;  %v287_v7 = vld [vmem:[%s1457_s30] sm:$0xff]  ;;  %v300_v10 = vld [vmem:[%s1464_s15 + $0x28] sm:$0xff] }
  0x92   : > { %v719_v6 = vpack.c.bf16 %v298_v5, %v297_v3  ;;  %v291_v8 = vld [vmem:[%s1457_s30 + $0x20] sm:$0xff]  ;;  %703 = vmatprep.mubr.f32.mxu0 %v287_v7  ;;  %v301_v12 = vld [vmem:[%s1464_s15 + $0x30] sm:$0xff]  ;;  %v302_v13 = vld [vmem:[%s1464_s15 + $0x38] sm:$0xff] }
  0x93   : > { %716 = vmatprep.subr.bf16.mxu0 %v715_v4  ;;  %747 = vmatprep.subr.bf16.mxu1 %v715_v4  ;;  %v299_v9 = vld [vmem:[%s1464_s15 + $0x20] sm:$0xff]  ;;  %v727_v14 = vpack.c.bf16 %v302_v13, %v301_v12  ;;  %v304_v16 = vld [vmem:[%s1464_s15 + $0x48] sm:$0xff]  ;;  %v305_v18 = vld [vmem:[%s1464_s15 + $0x50] sm:$0xff] }
  0x94   : > { %718 = vmatpush3.bf16.xpose.msra.mxu0 %v715_v4  ;;  %755 = vmatpush3.bf16.xpose.msra.mxu1 %v715_v4  ;;  %v723_v11 = vpack.c.bf16 %v300_v10, %v299_v9  ;;  %v303_v15 = vld [vmem:[%s1464_s15 + $0x40] sm:$0xff]  ;;  %v306_v19 = vld [vmem:[%s1464_s15 + $0x58] sm:$0xff]  ;;  %v308_v22 = vld [vmem:[%s1464_s15 + $0x68] sm:$0xff] }
  0x95   : > { %720 = vmatprep.subr.bf16.mxu0 %v719_v6  ;;  %748 = vmatprep.subr.bf16.mxu1 %v719_v6  ;;  %v731_v17 = vpack.c.bf16 %v304_v16, %v303_v15  ;;  %v735_v20 = vpack.c.bf16 %v306_v19, %v305_v18  ;;  %v307_v21 = vld [vmem:[%s1464_s15 + $0x60] sm:$0xff]  ;;  %v309_v24 = vld [vmem:[%s1464_s15 + $0x70] sm:$0xff]  ;;  %v310_v25 = vld [vmem:[%s1464_s15 + $0x78] sm:$0xff] }
  0x96   : > { %709 = vmatprep.mubr.f32.mxu1 %v291_v8  ;;  %v739_v23 = vpack.c.bf16 %v308_v22, %v307_v21  ;;  %v743_v26 = vpack.c.bf16 %v310_v25, %v309_v24  ;;  %v288_v27 = vld [vmem:[%s1457_s30 + $0x8] sm:$0xff]  ;;  %v289_v29 = vld [vmem:[%s1457_s30 + $0x10] sm:$0xff]  ;;  %v290_v31 = vld [vmem:[%s1457_s30 + $0x18] sm:$0xff]  ;;  %p636_p0 = scmp.ne.s32.totalorder %s1671_s4, 1 }
  0x97   : > { %v292_v28 = vld [vmem:[%s1457_s30 + $0x28] sm:$0xff]  ;;  %v293_v30 = vld [vmem:[%s1457_s30 + $0x30] sm:$0xff]  ;;  %v294_v32 = vld [vmem:[%s1457_s30 + $0x38] sm:$0xff] }
  0x98   : > { %v312_v33 = vld [vmem:[#allocation2 + $0x8] sm:$0xff]  ;;  %v311_v35 = vld [vmem:[#allocation2] sm:$0xff]  ;;  %v314_v45 = vld [vmem:[#allocation2 + $0x18] sm:$0xff] }
  0x99   : > { %v316_v34 = vld [vmem:[#allocation2 + $0x28] sm:$0xff]  ;;  %v315_v36 = vld [vmem:[#allocation2 + $0x20] sm:$0xff]  ;;  %v318_v46 = vld [vmem:[#allocation2 + $0x38] sm:$0xff] }
  0x9a   : > { %v313_v47 = vld [vmem:[#allocation2 + $0x10] sm:$0xff]  ;;  %v637_v58 = vld [vmem:[%s273_s1] ss:$0 sm:$0xff] (!%p636_p0) }
  0x9b   : > { %v317_v48 = vld [vmem:[#allocation2 + $0x30] sm:$0xff] }
  0x9c   : > { %722 = vmatpush3.bf16.xpose.msra.mxu0 %v719_v6  ;;  %756 = vmatpush3.bf16.xpose.msra.mxu1 %v719_v6 }
  0x9d   : > { %724 = vmatprep.subr.bf16.mxu0 %v723_v11  ;;  %749 = vmatprep.subr.bf16.mxu1 %v723_v11 }
  0xa4   : > { %726 = vmatpush3.bf16.xpose.msra.mxu0 %v723_v11  ;;  %757 = vmatpush3.bf16.xpose.msra.mxu1 %v723_v11 }
  0xa5   : > { %728 = vmatprep.subr.bf16.mxu0 %v727_v14  ;;  %750 = vmatprep.subr.bf16.mxu1 %v727_v14 }
  0xac   : > { %730 = vmatpush3.bf16.xpose.msra.mxu0 %v727_v14  ;;  %758 = vmatpush3.bf16.xpose.msra.mxu1 %v727_v14 }
  0xad   : > { %732 = vmatprep.subr.bf16.mxu0 %v731_v17  ;;  %751 = vmatprep.subr.bf16.mxu1 %v731_v17 }
  0xb4   : > { %734 = vmatpush3.bf16.xpose.msra.mxu0 %v731_v17  ;;  %759 = vmatpush3.bf16.xpose.msra.mxu1 %v731_v17 }
  0xb5   : > { %736 = vmatprep.subr.bf16.mxu0 %v735_v20  ;;  %752 = vmatprep.subr.bf16.mxu1 %v735_v20 }
  0xbc   : > { %738 = vmatpush3.bf16.xpose.msra.mxu0 %v735_v20  ;;  %760 = vmatpush3.bf16.xpose.msra.mxu1 %v735_v20 }
  0xbd   : > { %740 = vmatprep.subr.bf16.mxu0 %v739_v23  ;;  %753 = vmatprep.subr.bf16.mxu1 %v739_v23 }
  0xc4   : > { %742 = vmatpush3.bf16.xpose.msra.mxu0 %v739_v23  ;;  %761 = vmatpush3.bf16.xpose.msra.mxu1 %v739_v23 }
  0xc5   : > { %744 = vmatprep.subr.bf16.mxu0 %v743_v26  ;;  %754 = vmatprep.subr.bf16.mxu1 %v743_v26 }
  0xcc   : > { %746 = vmatpush3.bf16.xpose.msra.mxu0 %v743_v26  ;;  %762 = vmatpush3.bf16.xpose.msra.mxu1 %v743_v26 }
  0xd3   : > { %704 = vmatmul.mubr.f32.vlgmr.msra.gmra.mrb[0].mxu0 %v288_v27  ;;  %710 = vmatmul.mubr.f32.vlgmr.msra.gmra.mrb[0].mxu1 %v292_v28 }
  0xd4   : > { %706 = vmatprep.mubr.f32.mxu0 %v289_v29  ;;  %712 = vmatprep.mubr.f32.mxu1 %v293_v30 }
  0xd7   : > { %707 = vmatmul.mubr.f32.gmra.mrb[2].mxu0 %v290_v31  ;;  %713 = vmatmul.mubr.f32.gmra.mrb[2].mxu1 %v294_v32 }
 0x1a6   : > { %v705_v37 = vpop.f32.mrb[0].mxu0  ;;  %v711_v38 = vpop.f32.mrb[0].mxu1 }
 0x1a7   : > { %v425_v39 = vadd.f32 %v705_v37, %v312_v33  ;;  %v429_v40 = vadd.f32 %v711_v38, %v316_v34  ;;  %v385_v41 = vpop.f32.mrb[1].mxu0  ;;  %v405_v42 = vpop.f32.mrb[1].mxu1 }
 0x1a8   : > { %v424_v43 = vadd.f32 %v385_v41, %v311_v35  ;;  %v428_v44 = vadd.f32 %v405_v42, %v315_v36  ;;  %443 = sbr.rel (%p636_p0) target bundleno = 442 (0x1ba), region = 48 }
 0x1a9   : > { %433 = vst [vmem:[#allocation2 + $0x8] sm:$0xff] %v425_v39  ;;  %437 = vst [vmem:[#allocation2 + $0x28] sm:$0xff] %v429_v40 }
 0x1aa   : > { %432 = vst [vmem:[#allocation2] sm:$0xff] %v424_v43  ;;  %436 = vst [vmem:[#allocation2 + $0x20] sm:$0xff] %v428_v44  ;;  %v708_v49 = vpop.f32.mrb[2].mxu0  ;;  %v714_v50 = vpop.f32.mrb[2].mxu1 }
 0x1ab   : > { %v427_v51 = vadd.f32 %v708_v49, %v314_v45  ;;  %v431_v52 = vadd.f32 %v714_v50, %v318_v46  ;;  %v395_v53 = vpop.f32.mrb[3].mxu0  ;;  %v415_v54 = vpop.f32.mrb[3].mxu1 }
 0x1ac   : > { %v426_v55 = vadd.f32 %v395_v53, %v313_v47  ;;  %v430_v56 = vadd.f32 %v415_v54, %v317_v48 }
 0x1ad   : > { %435 = vst [vmem:[#allocation2 + $0x18] sm:$0xff] %v427_v51  ;;  %439 = vst [vmem:[#allocation2 + $0x38] sm:$0xff] %v431_v52 }
 0x1ae   : > { %434 = vst [vmem:[#allocation2 + $0x10] sm:$0xff] %v426_v55  ;;  %438 = vst [vmem:[#allocation2 + $0x30] sm:$0xff] %v430_v56 }
 0x1b0   : > { %v445_v59 = vld [vmem:[#allocation2 + $0x8] sm:$0xff] }
 0x1b1   : > { %v444_v57 = vld [vmem:[#allocation2] sm:$0xff]  ;;  %v460_v61 = vadd.f32 %v637_v58, %v445_v59  ;;  %v449_v4 = vld [vmem:[#allocation2 + $0x28] sm:$0xff] }
 0x1b2   : > { %v459_v60 = vadd.f32 %v637_v58, %v444_v57  ;;  %v448_v0 = vld [vmem:[#allocation2 + $0x20] sm:$0xff]  ;;  %v464_v7 = vadd.f32 %v637_v58, %v449_v4 }
 0x1b3   : > { %v463_v3 = vadd.f32 %v637_v58, %v448_v0  ;;  %468 = vst [vmem:[%s1481_s21 + $0x8] sm:$0xff] %v460_v61 }
 0x1b4   : > { %v447_v63 = vld [vmem:[#allocation2 + $0x18] sm:$0xff]  ;;  %467 = vst [vmem:[%s1481_s21] sm:$0xff] %v459_v60  ;;  %472 = vst [vmem:[%s1481_s21 + $0x28] sm:$0xff] %v464_v7 }
 0x1b5   : > { %v446_v62 = vld [vmem:[#allocation2 + $0x10] sm:$0xff]  ;;  %v462_v2 = vadd.f32 %v637_v58, %v447_v63  ;;  %v451_v6 = vld [vmem:[#allocation2 + $0x38] sm:$0xff]  ;;  %471 = vst [vmem:[%s1481_s21 + $0x20] sm:$0xff] %v463_v3 }
 0x1b6   : > { %v461_v1 = vadd.f32 %v637_v58, %v446_v62  ;;  %v450_v5 = vld [vmem:[#allocation2 + $0x30] sm:$0xff]  ;;  %v466_v9 = vadd.f32 %v637_v58, %v451_v6 }
 0x1b7   : > { %v465_v8 = vadd.f32 %v637_v58, %v450_v5  ;;  %470 = vst [vmem:[%s1481_s21 + $0x18] sm:$0xff] %v462_v2 }
 0x1b8   : > { %469 = vst [vmem:[%s1481_s21 + $0x10] sm:$0xff] %v461_v1  ;;  %474 = vst [vmem:[%s1481_s21 + $0x38] sm:$0xff] %v466_v9 }
 0x1b9   : > { %473 = vst [vmem:[%s1481_s21 + $0x30] sm:$0xff] %v465_v8 }
 0x1ba PF: > { %s1672_s30 = sld [smem:[#allocation13_spill]]  ;;  %s1673_s5 = sld [smem:[#allocation17_spill]] }
 0x1bb   : > { %s491_s8 = sshll.u32 %s1481_s21, 4  ;;  %s1674_s1 = sld [smem:[#allocation21_spill]]  ;;  %s1525_s8 = int_to_ptr.vmem [resolvable:$true] %s491_s8 }
 0x1bc   : > { %s1534_s4 = scalar_lea.sflag [#allocation5], %s266_s28  ;;  %s977_s29 = scalar_lea.vmem %s1525_s8, 1024 }
 0x1bd   : > { %p978_p13 = scmp.ne.s32.totalorder %s1525_s8, %s977_s29 }
 0x1c0   : > { %s646_s0 = sshll.u32 %s1672_s30, 5  ;;  %p1675_p2 = scmp.ne.s32.totalorder %s1673_s5, 0 }
 0x1c1   : > { %s488_s15 = sadd.s32 %s1123_s22, %s646_s0  ;;  %s1151_s22 = smov [#allocation8]  }
 0x1c2   : > { %s641_s9 = sshll.u32 %s488_s15, 7  ;;  %p979_p10 = pnand %p978_p13, %p1675_p2 }
 0x1c3   : > { %s1530_s26 = scalar_lea.hbm %s1674_s1, %s641_s9  ;;  %s981_s21 = sshll.u32 %s1151_s22, 4  ;;  %s982_s21 = int_to_ptr.vmem [resolvable:$false] %s981_s21 }
 0x1c4   : > { %p980_p12 = pneg %p979_p10  ;;  %s983_s3 = scalar_lea.vmem %s982_s21, 2048 }
 0x1c5   : > { %p984_p11 = scmp.lt.s32.totalorder %s1525_s8, %s982_s21  ;;  %p985_p3 = scmp.lt.s32.totalorder %s983_s3, %s977_s29 }
 0x1c7   : > { %p986_p4 = por %p985_p3, %p984_p11 }
 0x1c9   : > { %p987_p8 = pnand %p986_p4, %p980_p12 }
 0x1cb   : > { %990 = shalt.err (!%p987_p8)
}
 0x1cc   : > { %s991_s28 = scalar_lea.hbm %s1530_s26, 1024  ;;  %s995_s15 = scalar_lea.hbm %s1674_s1, 8192 }
 0x1cd   : > { %p992_p6 = scmp.ne.s32.totalorder %s1530_s26, %s991_s28  ;;  %p996_p1 = scmp.lt.u32.totalorder %s1530_s26, %s1674_s1 }
 0x1ce   : > { %p997_p5 = scmp.lt.u32.totalorder %s995_s15, %s991_s28  ;;  %p999_p13 = scmp.lt.u32.totalorder %s991_s28, %s1530_s26 }
 0x1cf   : > { %p993_p9 = pnand %p992_p6, %p1675_p2 }
 0x1d0   : > { %p998_p0 = por %p997_p5, %p996_p1 }
 0x1d1   : > { %p994_p7 = pneg %p993_p9 }
 0x1d2   : > { %p1000_p10 = por %p999_p13, %p998_p0 }
 0x1d4   : > { %p1001_p12 = pnand %p1000_p10, %p994_p7 }
 0x1d6   : > { %1004 = shalt.err (!%p1001_p12)
}
 0x1d7   : > { %s1152_s18 = smov 128   ;;  %s1153_s29 = smov 512  }
 0x1d8   : > { %s1154_s22 = smov 8  }
 0x1d9   : > { %767 = dma.vmem_to_hbm [thread:$0]  (%p1675_p2), %s1525_s8, 1024, %s1530_s26, %s1534_s4, %s1152_s18, %s1153_s29, %s1154_s22  }
 0x1da PF: > { %p781_p11 = scmp.ge.s32.totalorder %s1143_s27, 2  ;;  %s506_s21 = sand.u32 1, %s1083_s12  }
 0x1db   : > { %p1676_p3 = scmp.ne.s32.totalorder %s1661_s23, 0  ;;  %s507_s3 = scalar_lea.sflag [#allocation5], %s506_s21 }
 0x1dd   : > { %p777_p4 = pnand %p781_p11, %p1676_p3 }
 0x1df   : > { %1078 = dma.done.wait (!%p777_p4), %s507_s3, 1024  }
 0x1e0   : > { %1080 = vsyncadd (!%p777_p4), %s507_s3, 4294966272  ;;  %s22_s27 = sadd.s32 1, %s1143_s27   ;;  %s1678_s23 = sld [smem:[#allocation14_spill]] }
 0x1e1   : > { %p1563_p8 = scmp.ge.s32.totalorder %s22_s27, 18   ;;  %s1679_s5 = sld [smem:[#allocation15_spill]] }
 0x1e2   : > { %s1680_s8 = sld [smem:[#allocation16_spill]]  ;;  %s1681_s26 = sld [smem:[#allocation18_spill]] }
 0x1e3   : > { %s1682_s12 = smov %s1087_s13  ;;  %s1683_s13 = smov %s1091_s14 }
 0x1e4   : > { %s1684_s14 = smov %s1397_s6  ;;  %s1685_s15 = smov %s1099_s16 }
 0x1e5   : > { %s1686_s16 = smov %s1103_s17  ;;  %s1687_s17 = smov %s1383_s10 }
 0x1e6   : > { %s1688_s18 = smov %s1111_s19  ;;  %s1689_s19 = smov %s1115_s20 }
 0x1e7   : > { %s1690_s20 = smov %s1394_s11  ;;  %s1691_s21 = smov %s1131_s24 }
 0x1e8   : > { %s1692_s22 = smov %s1135_s25  ;;  %s1693_s24 = smov %s1679_s5 }
 0x1e9   : > { %s1694_s25 = smov %s1680_s8  ;;  %21 = sbr.rel (!%p1563_p8) target bundleno = 17 (0x11), region = 101 }
 0x1f0   :  { %512 = vsyncpa [#allocation4], 1 }
 0x1f1   :  { %514 = vsyncpa [#allocation4 + $0x1], 1 }
 0x1f2   :  { %515 = vsyncpa [#allocation7], 1 }
 0x1f3   :  { %517 = vsyncpa [#allocation7 + $0x1], 1 }
 0x1f4   :  { %518 = vsyncpa [#allocation5], 1 }
 0x1f5   :  { %520 = vsyncpa [#allocation5 + $0x1], 1 }

</bundles_post_ra>
